<compile_context>
chip_gen: v6e
topology: v6e:2x2x1
jax: 0.10.0
libtpu: 0.0.40
codegen_flags: <defaults>
</compile_context>

<pallas_src>
import functools

import jax
import jax.numpy as jnp
from jax.experimental import pallas as pl
from jax.experimental.pallas import tpu as pltpu

NEG_SLOPE = 0.2
CP = 8  # channel dim padded to one full sublane tile


def _leaky_relu(x):
    return jnp.where(x > 0, x, NEG_SLOPE * x)


def resblock_dense_kernel(x0_ref, x1_ref, x2_ref, w0_ref, b0_ref, w1_ref,
                          b1_ref, mask_ref, out_ref, taps_ref, *, wp, mp):
    """Fused ResBlock_dense on flattened, zero-padded (channel, spatial) slabs.

    Shapes (all VMEM-resident, single grid step):
      x0_ref, x1_ref, x2_ref : (CP, Mp)   zero-padded slabs, channels padded to 8
      w0_ref, w1_ref         : (3, CP, 3*CP)  per-ky weight groups (o, kx*CP+i)
      b0_ref, b1_ref         : (CP, 1)
      mask_ref               : (1, Mp)   1.0 at interior pixels, 0.0 elsewhere
      out_ref                : (CP, Mp)
      taps_ref (scratch)     : (3*CP, Mp)  ky-group tap slab, 8-aligned rows
    wp = W + 2 (padded row stride), mp = Mp (flat length, multiple of 128).
    """

    def conv3x3(x, w_ref, b_ref):
        # 3 ky row-groups: lane-roll the 3 taps of the group into 8-aligned
        # sublane slices of the scratch, one small MXU dot per group, accumulate.
        acc = None
        for ky in range(3):
            for kx in range(3):
                s = (ky - 1) * wp + (kx - 1)            # flat offset of tap
                tap = x if s == 0 else pltpu.roll(x, (-s) % mp, axis=1)
                taps_ref[kx * CP:(kx + 1) * CP, :] = tap
            # f32 x f32 taps; preferred f32 accumulate (passes 1e-4 vs XLA conv).
            g = jnp.dot(w_ref[ky], taps_ref[...],
                        preferred_element_type=jnp.float32)
            acc = g if acc is None else acc + g
        return acc + b_ref[...]                          # (CP, Mp), lane-dense

    mask = mask_ref[...]
    x0 = x0_ref[...]

    # conv0 + leaky_relu; mask re-creates conv1's zero padding on borders/tail.
    fea = _leaky_relu(conv3x3(x0, w0_ref, b0_ref)) * mask
    # conv1 + leaky_relu (border/tail lanes are garbage; sliced off outside).
    fea = _leaky_relu(conv3x3(fea, w1_ref, b1_ref))

    out = x1_ref[...] + fea * (x2_ref[...] + 1.0)
    out_ref[...] = out.astype(out_ref.dtype)


@jax.jit
def resblock_dense_pallas(x0, x1, x2, w0, b0, w1, b1):
    """x0: (N, Cin, H, W); x1, x2: (N, Cout, H, W) (NCHW, PyTorch layout).
    w0: (3,3,Cin,Cout), w1: (3,3,Cout,Cout) HWIO; b0, b1: (C,)."""
    N, cin, H, W = x0.shape
    cout = w0.shape[-1]
    assert cin <= CP and cout <= CP
    Hp, Wp = H + 2, W + 2
    M = N * Hp * Wp
    Mp = ((M + 127) // 128) * 128          # lane-dense flat length

    def to_slab(x, c):
        xp = jnp.pad(x.astype(jnp.float32),
                     ((0, 0), (0, CP - c), (1, 1), (1, 1)))   # (N, CP, Hp, Wp)
        xf = jnp.transpose(xp, (1, 0, 2, 3)).reshape(CP, M)   # (CP, M)
        return jnp.pad(xf, ((0, 0), (0, Mp - M)))

    x0f, x1f, x2f = to_slab(x0, cin), to_slab(x1, cout), to_slab(x2, cout)

    def pack_w(w, ci, co):
        # HWIO (ky, kx, i, o), channels zero-padded to CP,
        # -> (ky, o, kx, i) -> (3, CP, 3*CP) : matches tap row order kx*CP + i.
        wpad = jnp.pad(w.astype(jnp.float32),
                       ((0, 0), (0, 0), (0, CP - ci), (0, CP - co)))
        return jnp.transpose(wpad, (0, 3, 1, 2)).reshape(3, CP, 3 * CP)

    def pack_b(b, co):
        return jnp.pad(b.astype(jnp.float32), (0, CP - co)).reshape(CP, 1)

    w0t, w1t = pack_w(w0, cin, cout), pack_w(w1, cout, cout)
    b0c, b1c = pack_b(b0, cout), pack_b(b1, cout)

    # Interior mask over the flattened padded grid, 0 on borders and tail pad.
    yy = jnp.arange(Hp)
    xx = jnp.arange(Wp)
    m2d = (((yy >= 1) & (yy <= H))[:, None]
           & ((xx >= 1) & (xx <= W))[None, :]).astype(jnp.float32)
    mask = jnp.broadcast_to(m2d.reshape(1, Hp * Wp), (N, Hp * Wp)).reshape(1, M)
    mask = jnp.pad(mask, ((0, 0), (0, Mp - M)))

    kernel = functools.partial(resblock_dense_kernel, wp=Wp, mp=Mp)
    vmem = pl.BlockSpec(memory_space=pltpu.MemorySpace.VMEM)

    outf = pl.pallas_call(
        kernel,
        out_shape=jax.ShapeDtypeStruct((CP, Mp), jnp.float32),
        in_specs=[vmem] * 8,
        out_specs=vmem,
        scratch_shapes=[pltpu.VMEM((3 * CP, Mp), jnp.float32)],
    )(x0f, x1f, x2f, w0t, b0c, w1t, b1c, mask)

    # TODO(synk): when chaining dense blocks (RRDB-style), keep activations in
    # the (CP, Mp) slab layout between fused blocks; convert NCHW<->slab once.
    out = outf[:, :M].reshape(CP, N, Hp, Wp)
    out = jnp.transpose(out, (1, 0, 2, 3))[:, :cout, 1:H + 1, 1:W + 1]
    out = out.astype(x1.dtype)
    # Module returns (new_x0, x[1], x[2]) with x[1], x[2] passed through.
    return out, x1, x2


# --------------------------- plain-JAX reference ---------------------------
def _conv3x3_ref(x, w, b):
    y = jax.lax.conv_general_dilated(
        x, w, window_strides=(1, 1), padding="SAME",
        dimension_numbers=("NCHW", "HWIO", "NCHW"))
    return y + b.reshape(1, -1, 1, 1)


def resblock_dense_ref(x0, x1, x2, w0, b0, w1, b1):
    fea = _leaky_relu(_conv3x3_ref(x0, w0, b0))
    fea = _leaky_relu(_conv3x3_ref(fea, w1, b1))
    return x1 + fea * (x2 + 1.0), x1, x2


if __name__ == "__main__":
    # Small shapes consistent with the module's forward (fin = fout = 4).
    N, H, W = 2, 16, 16
    FIN, FOUT = 4, 4

    key = jax.random.PRNGKey(0)
    k = jax.random.split(key, 7)

    x0 = jax.random.normal(k[0], (N, FIN, H, W), jnp.float32)
    x1 = jax.random.normal(k[1], (N, FOUT, H, W), jnp.float32)
    x2 = jax.random.normal(k[2], (N, FOUT, H, W), jnp.float32)

    # Deterministic Kaiming-uniform-ish conv params (HWIO layout), bias=True.
    fan0 = FIN * 9
    fan1 = FOUT * 9
    w0 = jax.random.uniform(k[3], (3, 3, FIN, FOUT), jnp.float32,
                            -1.0 / jnp.sqrt(fan0), 1.0 / jnp.sqrt(fan0))
    b0 = jax.random.uniform(k[4], (FOUT,), jnp.float32,
                            -1.0 / jnp.sqrt(fan0), 1.0 / jnp.sqrt(fan0))
    w1 = jax.random.uniform(k[5], (3, 3, FOUT, FOUT), jnp.float32,
                            -1.0 / jnp.sqrt(fan1), 1.0 / jnp.sqrt(fan1))
    b1 = jax.random.uniform(k[6], (FOUT,), jnp.float32,
                            -1.0 / jnp.sqrt(fan1), 1.0 / jnp.sqrt(fan1))

    out, out_x1, out_x2 = resblock_dense_pallas(x0, x1, x2, w0, b0, w1, b1)
    out = jax.block_until_ready(out)

    ref, _, _ = resblock_dense_ref(x0, x1, x2, w0, b0, w1, b1)
    assert jnp.allclose(out, ref, atol=1e-4, rtol=1e-4), (
        "Pallas output mismatch vs JAX reference")
    assert jnp.array_equal(out_x1, x1) and jnp.array_equal(out_x2, x2)

    print("KERNEL_OK")
</pallas_src>

<mosaic_0001>
module attributes {stable_mosaic.version = 11 : i64} {
  func.func @resblock_dense_kernel(%arg0: memref<8x768xf32, #tpu.memory_space<vmem>>, %arg1: memref<8x768xf32, #tpu.memory_space<vmem>>, %arg2: memref<8x768xf32, #tpu.memory_space<vmem>>, %arg3: memref<3x8x24xf32, #tpu.memory_space<vmem>>, %arg4: memref<8x1xf32, #tpu.memory_space<vmem>>, %arg5: memref<3x8x24xf32, #tpu.memory_space<vmem>>, %arg6: memref<8x1xf32, #tpu.memory_space<vmem>>, %arg7: memref<1x768xf32, #tpu.memory_space<vmem>>, %arg8: memref<8x768xf32, #tpu.memory_space<vmem>>, %arg9: memref<24x768xf32, #tpu.memory_space<vmem>>) attributes {dimension_semantics = [], scalar_prefetch = 0 : i64, scratch_operands = 1 : i64, tpu.core_type = #tpu.core_type<tc>} {
    %c0 = arith.constant 0 : index
    %c0_0 = arith.constant 0 : index
    %0 = vector.load %arg7[%c0, %c0_0] : memref<1x768xf32, #tpu.memory_space<vmem>>, vector<1x768xf32>
    %c0_1 = arith.constant 0 : index
    %c0_2 = arith.constant 0 : index
    %1 = vector.load %arg0[%c0_1, %c0_2] : memref<8x768xf32, #tpu.memory_space<vmem>>, vector<8x768xf32>
    %c19_i32 = arith.constant 19 : i32
    %2 = tpu.dynamic_rotate %1 by %c19_i32 dim 1 : vector<8x768xf32>, i32 -> vector<8x768xf32>
    %c0_3 = arith.constant 0 : index
    %c0_4 = arith.constant 0 : index
    %3 = vector.load %arg9[%c0_3, %c0_4] : memref<24x768xf32, #tpu.memory_space<vmem>>, vector<8x768xf32>
    tpu.vector_store %arg9[%c0_3, %c0_4], %2 {strides = array<i32>} : memref<24x768xf32, #tpu.memory_space<vmem>>, vector<8x768xf32>,
    %c18_i32 = arith.constant 18 : i32
    %4 = tpu.dynamic_rotate %1 by %c18_i32 dim 1 : vector<8x768xf32>, i32 -> vector<8x768xf32>
    %c8 = arith.constant 8 : index
    %c0_5 = arith.constant 0 : index
    %5 = vector.load %arg9[%c8, %c0_5] : memref<24x768xf32, #tpu.memory_space<vmem>>, vector<8x768xf32>
    tpu.vector_store %arg9[%c8, %c0_5], %4 {strides = array<i32>} : memref<24x768xf32, #tpu.memory_space<vmem>>, vector<8x768xf32>,
    %c17_i32 = arith.constant 17 : i32
    %6 = tpu.dynamic_rotate %1 by %c17_i32 dim 1 : vector<8x768xf32>, i32 -> vector<8x768xf32>
    %c16 = arith.constant 16 : index
    %c0_6 = arith.constant 0 : index
    %7 = vector.load %arg9[%c16, %c0_6] : memref<24x768xf32, #tpu.memory_space<vmem>>, vector<8x768xf32>
    tpu.vector_store %arg9[%c16, %c0_6], %6 {strides = array<i32>} : memref<24x768xf32, #tpu.memory_space<vmem>>, vector<8x768xf32>,
    %c0_7 = arith.constant 0 : index
    %c0_8 = arith.constant 0 : index
    %c0_9 = arith.constant 0 : index
    %8 = vector.load %arg3[%c0_7, %c0_8, %c0_9] : memref<3x8x24xf32, #tpu.memory_space<vmem>>, vector<1x8x24xf32>
    %9 = vector.shape_cast %8 : vector<1x8x24xf32> to vector<8x24xf32>
    %c0_10 = arith.constant 0 : index
    %c0_11 = arith.constant 0 : index
    %10 = vector.load %arg9[%c0_10, %c0_11] : memref<24x768xf32, #tpu.memory_space<vmem>>, vector<24x768xf32>
    %cst = arith.constant dense<0.000000e+00> : vector<8x768xf32>
    %11 = tpu.matmul %9, %10, %cst {dimension_numbers = #tpu.dot_dimension_numbers<[1], [0], [0], [1], [0, 0, 1, 1], [], []>} : vector<8x24xf32>, vector<24x768xf32>, vector<8x768xf32> -> vector<8x768xf32>
    %c1_i32 = arith.constant 1 : i32
    %12 = tpu.dynamic_rotate %1 by %c1_i32 dim 1 : vector<8x768xf32>, i32 -> vector<8x768xf32>
    %c0_12 = arith.constant 0 : index
    %c0_13 = arith.constant 0 : index
    %13 = vector.load %arg9[%c0_12, %c0_13] : memref<24x768xf32, #tpu.memory_space<vmem>>, vector<8x768xf32>
    tpu.vector_store %arg9[%c0_12, %c0_13], %12 {strides = array<i32>} : memref<24x768xf32, #tpu.memory_space<vmem>>, vector<8x768xf32>,
    %c8_14 = arith.constant 8 : index
    %c0_15 = arith.constant 0 : index
    %14 = vector.load %arg9[%c8_14, %c0_15] : memref<24x768xf32, #tpu.memory_space<vmem>>, vector<8x768xf32>
    tpu.vector_store %arg9[%c8_14, %c0_15], %1 {strides = array<i32>} : memref<24x768xf32, #tpu.memory_space<vmem>>, vector<8x768xf32>,
    %c767_i32 = arith.constant 767 : i32
    %15 = tpu.dynamic_rotate %1 by %c767_i32 dim 1 : vector<8x768xf32>, i32 -> vector<8x768xf32>
    %c16_16 = arith.constant 16 : index
    %c0_17 = arith.constant 0 : index
    %16 = vector.load %arg9[%c16_16, %c0_17] : memref<24x768xf32, #tpu.memory_space<vmem>>, vector<8x768xf32>
    tpu.vector_store %arg9[%c16_16, %c0_17], %15 {strides = array<i32>} : memref<24x768xf32, #tpu.memory_space<vmem>>, vector<8x768xf32>,
    %c1 = arith.constant 1 : index
    %c0_18 = arith.constant 0 : index
    %c0_19 = arith.constant 0 : index
    %17 = vector.load %arg3[%c1, %c0_18, %c0_19] : memref<3x8x24xf32, #tpu.memory_space<vmem>>, vector<1x8x24xf32>
    %18 = vector.shape_cast %17 : vector<1x8x24xf32> to vector<8x24xf32>
    %c0_20 = arith.constant 0 : index
    %c0_21 = arith.constant 0 : index
    %19 = vector.load %arg9[%c0_20, %c0_21] : memref<24x768xf32, #tpu.memory_space<vmem>>, vector<24x768xf32>
    %cst_22 = arith.constant dense<0.000000e+00> : vector<8x768xf32>
    %20 = tpu.matmul %18, %19, %cst_22 {dimension_numbers = #tpu.dot_dimension_numbers<[1], [0], [0], [1], [0, 0, 1, 1], [], []>} : vector<8x24xf32>, vector<24x768xf32>, vector<8x768xf32> -> vector<8x768xf32>
    %21 = arith.addf %11, %20 : vector<8x768xf32>
    %c751_i32 = arith.constant 751 : i32
    %22 = tpu.dynamic_rotate %1 by %c751_i32 dim 1 : vector<8x768xf32>, i32 -> vector<8x768xf32>
    %c0_23 = arith.constant 0 : index
    %c0_24 = arith.constant 0 : index
    %23 = vector.load %arg9[%c0_23, %c0_24] : memref<24x768xf32, #tpu.memory_space<vmem>>, vector<8x768xf32>
    tpu.vector_store %arg9[%c0_23, %c0_24], %22 {strides = array<i32>} : memref<24x768xf32, #tpu.memory_space<vmem>>, vector<8x768xf32>,
    %c750_i32 = arith.constant 750 : i32
    %24 = tpu.dynamic_rotate %1 by %c750_i32 dim 1 : vector<8x768xf32>, i32 -> vector<8x768xf32>
    %c8_25 = arith.constant 8 : index
    %c0_26 = arith.constant 0 : index
    %25 = vector.load %arg9[%c8_25, %c0_26] : memref<24x768xf32, #tpu.memory_space<vmem>>, vector<8x768xf32>
    tpu.vector_store %arg9[%c8_25, %c0_26], %24 {strides = array<i32>} : memref<24x768xf32, #tpu.memory_space<vmem>>, vector<8x768xf32>,
    %c749_i32 = arith.constant 749 : i32
    %26 = tpu.dynamic_rotate %1 by %c749_i32 dim 1 : vector<8x768xf32>, i32 -> vector<8x768xf32>
    %c16_27 = arith.constant 16 : index
    %c0_28 = arith.constant 0 : index
    %27 = vector.load %arg9[%c16_27, %c0_28] : memref<24x768xf32, #tpu.memory_space<vmem>>, vector<8x768xf32>
    tpu.vector_store %arg9[%c16_27, %c0_28], %26 {strides = array<i32>} : memref<24x768xf32, #tpu.memory_space<vmem>>, vector<8x768xf32>,
    %c2 = arith.constant 2 : index
    %c0_29 = arith.constant 0 : index
    %c0_30 = arith.constant 0 : index
    %28 = vector.load %arg3[%c2, %c0_29, %c0_30] : memref<3x8x24xf32, #tpu.memory_space<vmem>>, vector<1x8x24xf32>
    %29 = vector.shape_cast %28 : vector<1x8x24xf32> to vector<8x24xf32>
    %c0_31 = arith.constant 0 : index
    %c0_32 = arith.constant 0 : index
    %30 = vector.load %arg9[%c0_31, %c0_32] : memref<24x768xf32, #tpu.memory_space<vmem>>, vector<24x768xf32>
    %cst_33 = arith.constant dense<0.000000e+00> : vector<8x768xf32>
    %31 = tpu.matmul %29, %30, %cst_33 {dimension_numbers = #tpu.dot_dimension_numbers<[1], [0], [0], [1], [0, 0, 1, 1], [], []>} : vector<8x24xf32>, vector<24x768xf32>, vector<8x768xf32> -> vector<8x768xf32>
    %32 = arith.addf %21, %31 : vector<8x768xf32>
    %c0_34 = arith.constant 0 : index
    %c0_35 = arith.constant 0 : index
    %33 = vector.load %arg4[%c0_34, %c0_35] : memref<8x1xf32, #tpu.memory_space<vmem>>, vector<8x1xf32>
    %34 = vector.broadcast %33 : vector<8x1xf32> to vector<8x768xf32>
    %35 = arith.addf %32, %34 : vector<8x768xf32>
    %cst_36 = arith.constant 0.000000e+00 : f32
    %36 = vector.broadcast %cst_36 : f32 to vector<8x768xf32>
    %37 = arith.cmpf ogt, %35, %36 : vector<8x768xf32>
    %cst_37 = arith.constant 2.000000e-01 : f32
    %38 = vector.broadcast %cst_37 : f32 to vector<8x768xf32>
    %39 = arith.mulf %38, %35 : vector<8x768xf32>
    %40 = arith.select %37, %35, %39 : vector<8x768xi1>, vector<8x768xf32>
    %41 = vector.broadcast %0 : vector<1x768xf32> to vector<8x768xf32>
    %42 = arith.mulf %40, %41 : vector<8x768xf32>
    %c19_i32_38 = arith.constant 19 : i32
    %43 = tpu.dynamic_rotate %42 by %c19_i32_38 dim 1 : vector<8x768xf32>, i32 -> vector<8x768xf32>
    %c0_39 = arith.constant 0 : index
    %c0_40 = arith.constant 0 : index
    %44 = vector.load %arg9[%c0_39, %c0_40] : memref<24x768xf32, #tpu.memory_space<vmem>>, vector<8x768xf32>
    tpu.vector_store %arg9[%c0_39, %c0_40], %43 {strides = array<i32>} : memref<24x768xf32, #tpu.memory_space<vmem>>, vector<8x768xf32>,
    %c18_i32_41 = arith.constant 18 : i32
    %45 = tpu.dynamic_rotate %42 by %c18_i32_41 dim 1 : vector<8x768xf32>, i32 -> vector<8x768xf32>
    %c8_42 = arith.constant 8 : index
    %c0_43 = arith.constant 0 : index
    %46 = vector.load %arg9[%c8_42, %c0_43] : memref<24x768xf32, #tpu.memory_space<vmem>>, vector<8x768xf32>
    tpu.vector_store %arg9[%c8_42, %c0_43], %45 {strides = array<i32>} : memref<24x768xf32, #tpu.memory_space<vmem>>, vector<8x768xf32>,
    %c17_i32_44 = arith.constant 17 : i32
    %47 = tpu.dynamic_rotate %42 by %c17_i32_44 dim 1 : vector<8x768xf32>, i32 -> vector<8x768xf32>
    %c16_45 = arith.constant 16 : index
    %c0_46 = arith.constant 0 : index
    %48 = vector.load %arg9[%c16_45, %c0_46] : memref<24x768xf32, #tpu.memory_space<vmem>>, vector<8x768xf32>
    tpu.vector_store %arg9[%c16_45, %c0_46], %47 {strides = array<i32>} : memref<24x768xf32, #tpu.memory_space<vmem>>, vector<8x768xf32>,
    %c0_47 = arith.constant 0 : index
    %c0_48 = arith.constant 0 : index
    %c0_49 = arith.constant 0 : index
    %49 = vector.load %arg5[%c0_47, %c0_48, %c0_49] : memref<3x8x24xf32, #tpu.memory_space<vmem>>, vector<1x8x24xf32>
    %50 = vector.shape_cast %49 : vector<1x8x24xf32> to vector<8x24xf32>
    %c0_50 = arith.constant 0 : index
    %c0_51 = arith.constant 0 : index
    %51 = vector.load %arg9[%c0_50, %c0_51] : memref<24x768xf32, #tpu.memory_space<vmem>>, vector<24x768xf32>
    %cst_52 = arith.constant dense<0.000000e+00> : vector<8x768xf32>
    %52 = tpu.matmul %50, %51, %cst_52 {dimension_numbers = #tpu.dot_dimension_numbers<[1], [0], [0], [1], [0, 0, 1, 1], [], []>} : vector<8x24xf32>, vector<24x768xf32>, vector<8x768xf32> -> vector<8x768xf32>
    %c1_i32_53 = arith.constant 1 : i32
    %53 = tpu.dynamic_rotate %42 by %c1_i32_53 dim 1 : vector<8x768xf32>, i32 -> vector<8x768xf32>
    %c0_54 = arith.constant 0 : index
    %c0_55 = arith.constant 0 : index
    %54 = vector.load %arg9[%c0_54, %c0_55] : memref<24x768xf32, #tpu.memory_space<vmem>>, vector<8x768xf32>
    tpu.vector_store %arg9[%c0_54, %c0_55], %53 {strides = array<i32>} : memref<24x768xf32, #tpu.memory_space<vmem>>, vector<8x768xf32>,
    %c8_56 = arith.constant 8 : index
    %c0_57 = arith.constant 0 : index
    %55 = vector.load %arg9[%c8_56, %c0_57] : memref<24x768xf32, #tpu.memory_space<vmem>>, vector<8x768xf32>
    tpu.vector_store %arg9[%c8_56, %c0_57], %42 {strides = array<i32>} : memref<24x768xf32, #tpu.memory_space<vmem>>, vector<8x768xf32>,
    %c767_i32_58 = arith.constant 767 : i32
    %56 = tpu.dynamic_rotate %42 by %c767_i32_58 dim 1 : vector<8x768xf32>, i32 -> vector<8x768xf32>
    %c16_59 = arith.constant 16 : index
    %c0_60 = arith.constant 0 : index
    %57 = vector.load %arg9[%c16_59, %c0_60] : memref<24x768xf32, #tpu.memory_space<vmem>>, vector<8x768xf32>
    tpu.vector_store %arg9[%c16_59, %c0_60], %56 {strides = array<i32>} : memref<24x768xf32, #tpu.memory_space<vmem>>, vector<8x768xf32>,
    %c1_61 = arith.constant 1 : index
    %c0_62 = arith.constant 0 : index
    %c0_63 = arith.constant 0 : index
    %58 = vector.load %arg5[%c1_61, %c0_62, %c0_63] : memref<3x8x24xf32, #tpu.memory_space<vmem>>, vector<1x8x24xf32>
    %59 = vector.shape_cast %58 : vector<1x8x24xf32> to vector<8x24xf32>
    %c0_64 = arith.constant 0 : index
    %c0_65 = arith.constant 0 : index
    %60 = vector.load %arg9[%c0_64, %c0_65] : memref<24x768xf32, #tpu.memory_space<vmem>>, vector<24x768xf32>
    %cst_66 = arith.constant dense<0.000000e+00> : vector<8x768xf32>
    %61 = tpu.matmul %59, %60, %cst_66 {dimension_numbers = #tpu.dot_dimension_numbers<[1], [0], [0], [1], [0, 0, 1, 1], [], []>} : vector<8x24xf32>, vector<24x768xf32>, vector<8x768xf32> -> vector<8x768xf32>
    %62 = arith.addf %52, %61 : vector<8x768xf32>
    %c751_i32_67 = arith.constant 751 : i32
    %63 = tpu.dynamic_rotate %42 by %c751_i32_67 dim 1 : vector<8x768xf32>, i32 -> vector<8x768xf32>
    %c0_68 = arith.constant 0 : index
    %c0_69 = arith.constant 0 : index
    %64 = vector.load %arg9[%c0_68, %c0_69] : memref<24x768xf32, #tpu.memory_space<vmem>>, vector<8x768xf32>
    tpu.vector_store %arg9[%c0_68, %c0_69], %63 {strides = array<i32>} : memref<24x768xf32, #tpu.memory_space<vmem>>, vector<8x768xf32>,
    %c750_i32_70 = arith.constant 750 : i32
    %65 = tpu.dynamic_rotate %42 by %c750_i32_70 dim 1 : vector<8x768xf32>, i32 -> vector<8x768xf32>
    %c8_71 = arith.constant 8 : index
    %c0_72 = arith.constant 0 : index
    %66 = vector.load %arg9[%c8_71, %c0_72] : memref<24x768xf32, #tpu.memory_space<vmem>>, vector<8x768xf32>
    tpu.vector_store %arg9[%c8_71, %c0_72], %65 {strides = array<i32>} : memref<24x768xf32, #tpu.memory_space<vmem>>, vector<8x768xf32>,
    %c749_i32_73 = arith.constant 749 : i32
    %67 = tpu.dynamic_rotate %42 by %c749_i32_73 dim 1 : vector<8x768xf32>, i32 -> vector<8x768xf32>
    %c16_74 = arith.constant 16 : index
    %c0_75 = arith.constant 0 : index
    %68 = vector.load %arg9[%c16_74, %c0_75] : memref<24x768xf32, #tpu.memory_space<vmem>>, vector<8x768xf32>
    tpu.vector_store %arg9[%c16_74, %c0_75], %67 {strides = array<i32>} : memref<24x768xf32, #tpu.memory_space<vmem>>, vector<8x768xf32>,
    %c2_76 = arith.constant 2 : index
    %c0_77 = arith.constant 0 : index
    %c0_78 = arith.constant 0 : index
    %69 = vector.load %arg5[%c2_76, %c0_77, %c0_78] : memref<3x8x24xf32, #tpu.memory_space<vmem>>, vector<1x8x24xf32>
    %70 = vector.shape_cast %69 : vector<1x8x24xf32> to vector<8x24xf32>
    %c0_79 = arith.constant 0 : index
    %c0_80 = arith.constant 0 : index
    %71 = vector.load %arg9[%c0_79, %c0_80] : memref<24x768xf32, #tpu.memory_space<vmem>>, vector<24x768xf32>
    %cst_81 = arith.constant dense<0.000000e+00> : vector<8x768xf32>
    %72 = tpu.matmul %70, %71, %cst_81 {dimension_numbers = #tpu.dot_dimension_numbers<[1], [0], [0], [1], [0, 0, 1, 1], [], []>} : vector<8x24xf32>, vector<24x768xf32>, vector<8x768xf32> -> vector<8x768xf32>
    %73 = arith.addf %62, %72 : vector<8x768xf32>
    %c0_82 = arith.constant 0 : index
    %c0_83 = arith.constant 0 : index
    %74 = vector.load %arg6[%c0_82, %c0_83] : memref<8x1xf32, #tpu.memory_space<vmem>>, vector<8x1xf32>
    %75 = vector.broadcast %74 : vector<8x1xf32> to vector<8x768xf32>
    %76 = arith.addf %73, %75 : vector<8x768xf32>
    %cst_84 = arith.constant 0.000000e+00 : f32
    %77 = vector.broadcast %cst_84 : f32 to vector<8x768xf32>
    %78 = arith.cmpf ogt, %76, %77 : vector<8x768xf32>
    %cst_85 = arith.constant 2.000000e-01 : f32
    %79 = vector.broadcast %cst_85 : f32 to vector<8x768xf32>
    %80 = arith.mulf %79, %76 : vector<8x768xf32>
    %81 = arith.select %78, %76, %80 : vector<8x768xi1>, vector<8x768xf32>
    %c0_86 = arith.constant 0 : index
    %c0_87 = arith.constant 0 : index
    %82 = vector.load %arg1[%c0_86, %c0_87] : memref<8x768xf32, #tpu.memory_space<vmem>>, vector<8x768xf32>
    %c0_88 = arith.constant 0 : index
    %c0_89 = arith.constant 0 : index
    %83 = vector.load %arg2[%c0_88, %c0_89] : memref<8x768xf32, #tpu.memory_space<vmem>>, vector<8x768xf32>
    %cst_90 = arith.constant 1.000000e+00 : f32
    %84 = vector.broadcast %cst_90 : f32 to vector<8x768xf32>
    %85 = arith.addf %83, %84 : vector<8x768xf32>
    %86 = arith.mulf %81, %85 : vector<8x768xf32>
    %87 = arith.addf %82, %86 : vector<8x768xf32>
    %c0_91 = arith.constant 0 : index
    %c0_92 = arith.constant 0 : index
    %88 = vector.load %arg8[%c0_91, %c0_92] : memref<8x768xf32, #tpu.memory_space<vmem>>, vector<8x768xf32>
    tpu.vector_store %arg8[%c0_91, %c0_92], %87 {strides = array<i32>} : memref<8x768xf32, #tpu.memory_space<vmem>>, vector<8x768xf32>,
    return
  }
}

</mosaic_0001>

<bundles_post_ra>
// kernel: resblock_dense_pallas.1
= control target key start
LH: loop header
LB: loop body
LE: loop exit
PB: predicated region body
PF: predicated region fallthrough
CT: control target
= control target key end

     0   :  { %s2039_s9 = smov 127   ;;  %v2040_v5 = vmov 0.0   ;;  %s2041_s16 = smov 1   ;;  %v2048_v7 = vmov 0   ;;  %v48_v9 = vlaneseq  ;;  %vm208_vm2 = vcmask 195584   ;;  %s2779_s0 = inlined_call_operand.vmem [shape: f32[8,768], index: 0, kind: input, shape index: {}]   ;;  %s2780_s4 = inlined_call_operand.vmem [shape: f32[8,1], index: 4, kind: input, shape index: {}]   ;;  %s2781_s3 = inlined_call_operand.vmem [shape: f32[3,8,24], index: 3, kind: input, shape index: {}]   ;;  %s2782_s7 = inlined_call_operand.vmem [shape: f32[1,768], index: 7, kind: input, shape index: {}]   ;;  %s2783_s6 = inlined_call_operand.vmem [shape: f32[8,1], index: 6, kind: input, shape index: {}]   ;;  %s2784_s5 = inlined_call_operand.vmem [shape: f32[3,8,24], index: 5, kind: input, shape index: {}]   ;;  %s2785_s2 = inlined_call_operand.vmem [shape: f32[8,768], index: 2, kind: input, shape index: {}]   ;;  %s2786_s1 = inlined_call_operand.vmem [shape: f32[8,768], index: 1, kind: input, shape index: {}]   ;;  %s2787_s8 = inlined_call_operand.vmem [shape: f32[8,768], index: 8, kind: output, shape index: {}]  }
   0x1   :  { %v2097_v0 = vld [vmem:[%s2779_s0 + $0x8] sm:$0xff]  ;;  %v2102_v1 = vld [vmem:[%s2779_s0] sm:$0xff]  ;;  %v2111_v2 = vld [vmem:[%s2779_s0 + $0x10] sm:$0xff]  ;;  %276 = vmatprep.mubr.f32.mxu0 %v2040_v5  ;;  %347 = vmatprep.mubr.f32.mxu1 %v2040_v5  ;;  %s2042_s19 = smov 17   ;;  %s2044_s20 = smov 19  }
   0x2   :  { %165 = vrot.lane.b32.xlu0 %v2097_v0, %s2039_s9  ;;  %163 = vrot.lane.b32.xlu1 %v2102_v1, %s2039_s9  ;;  %v2116_v3 = vld [vmem:[%s2779_s0 + $0x18] sm:$0xff]  ;;  %v2125_v4 = vld [vmem:[%s2779_s0 + $0x20] sm:$0xff]  ;;  %s2045_s21 = smov 109   ;;  %s2046_s22 = smov 110   ;;  %v2226_v10 = vand.u32 127, %v48_v9 }
   0x3   :  { %v2136_v6 = vld [vmem:[%s2779_s0 + $0x28] sm:$0xff]  ;;  %s2043_s0 = smov 18   ;;  %s2047_s23 = smov 111   ;;  %2038 = vset.pattern.permute.xlu0 %v2048_v7  ;;  %v958_v8 = vld [vmem:[%s2780_s4] sm:$0xff] }
   0x4   :  { %vm175_vm0 = vcmp.lt.s32.totalorder %v2226_v10, 127  ;;  %vm144_vm1 = vcmp.lt.s32.totalorder %v2226_v10, 1  ;;  %v2006_v25 = vld [vmem:[%s2781_s3 + $0x8] sm:$0xff]  ;;  %vm100_vm3 = vcmp.lt.s32.totalorder %v2226_v10, 17  ;;  %vm75_vm4 = vcmp.lt.s32.totalorder %v2226_v10, 18  ;;  %v113_v55 = vld [vmem:[%s2781_s3] sm:$0xff] }
   0x5   :  { %vm50_vm5 = vcmp.lt.s32.totalorder %v2226_v10, 19  ;;  %vm703_vm6 = vcmp.lt.s32.totalorder %v2226_v10, 109  ;;  %vm678_vm7 = vcmp.lt.s32.totalorder %v2226_v10, 110  ;;  %vm653_vm8 = vcmp.lt.s32.totalorder %v2226_v10, 111 }
   0x6   :  { %167 = vrot.lane.b32.xlu0 %v2111_v2, %s2039_s9  ;;  %169 = vrot.lane.b32.xlu1 %v2116_v3, %s2039_s9 }
   0xa   :  { %171 = vrot.lane.b32.xlu0 %v2125_v4, %s2039_s9  ;;  %132 = vrot.lane.b32.xlu1 %v2102_v1, %s2041_s16 }
   0xe   :  { %134 = vrot.lane.b32.xlu0 %v2097_v0, %s2041_s16  ;;  %142 = vrot.lane.b32.xlu1 %v2136_v6, %s2041_s16 }
  0x12   :  { %173 = vrot.lane.b32.xlu0 %v2136_v6, %s2039_s9  ;;  %136 = vrot.lane.b32.xlu1 %v2111_v2, %s2041_s16 }
  0x16   :  { %138 = vrot.lane.b32.xlu0 %v2116_v3, %s2041_s16  ;;  %88 = vrot.lane.b32.xlu1 %v2102_v1, %s2042_s19 }
  0x1a   :  { %90 = vrot.lane.b32.xlu0 %v2097_v0, %s2042_s19  ;;  %98 = vrot.lane.b32.xlu1 %v2136_v6, %s2042_s19 }
  0x1e   :  { %140 = vrot.lane.b32.xlu0 %v2125_v4, %s2041_s16  ;;  %63 = vrot.lane.b32.xlu1 %v2102_v1, %s2043_s0 }
  0x22   :  { %65 = vrot.lane.b32.xlu0 %v2097_v0, %s2043_s0  ;;  %73 = vrot.lane.b32.xlu1 %v2136_v6, %s2043_s0 }
  0x26   :  { %92 = vrot.lane.b32.xlu0 %v2111_v2, %s2042_s19  ;;  %94 = vrot.lane.b32.xlu1 %v2116_v3, %s2042_s19 }
  0x2a   :  { %36 = vrot.lane.b32.xlu0 %v2102_v1, %s2044_s20  ;;  %38 = vrot.lane.b32.xlu1 %v2097_v0, %s2044_s20 }
  0x2e   :  { %46 = vrot.lane.b32.xlu0 %v2136_v6, %s2044_s20  ;;  %67 = vrot.lane.b32.xlu1 %v2111_v2, %s2043_s0 }
  0x32   :  { %69 = vrot.lane.b32.xlu0 %v2116_v3, %s2043_s0  ;;  %96 = vrot.lane.b32.xlu1 %v2125_v4, %s2042_s19 }
  0x36   :  { %40 = vrot.lane.b32.xlu0 %v2111_v2, %s2044_s20  ;;  %42 = vrot.lane.b32.xlu1 %v2116_v3, %s2044_s20 }
  0x3a   :  { %71 = vrot.lane.b32.xlu0 %v2125_v4, %s2043_s0  ;;  %693 = vrot.lane.b32.xlu1 %v2097_v0, %s2045_s21 }
  0x3e   :  { %695 = vrot.lane.b32.xlu0 %v2111_v2, %s2045_s21  ;;  %44 = vrot.lane.b32.xlu1 %v2125_v4, %s2044_s20 }
  0x42   :  { %691 = vrot.lane.b32.xlu0 %v2102_v1, %s2045_s21  ;;  %668 = vrot.lane.b32.xlu1 %v2097_v0, %s2046_s22 }
  0x46   :  { %670 = vrot.lane.b32.xlu0 %v2111_v2, %s2046_s22  ;;  %666 = vrot.lane.b32.xlu1 %v2102_v1, %s2046_s22 }
  0x4a   :  { %697 = vrot.lane.b32.xlu0 %v2116_v3, %s2045_s21  ;;  %699 = vrot.lane.b32.xlu1 %v2125_v4, %s2045_s21 }
  0x4e   :  { %643 = vrot.lane.b32.xlu0 %v2097_v0, %s2047_s23  ;;  %645 = vrot.lane.b32.xlu1 %v2111_v2, %s2047_s23 }
  0x52   :  { %641 = vrot.lane.b32.xlu0 %v2102_v1, %s2047_s23  ;;  %672 = vrot.lane.b32.xlu1 %v2116_v3, %s2046_s22 }
  0x56   :  { %674 = vrot.lane.b32.xlu0 %v2125_v4, %s2046_s22  ;;  %701 = vrot.lane.b32.xlu1 %v2136_v6, %s2045_s21 }
  0x5a   :  { %647 = vrot.lane.b32.xlu0 %v2116_v3, %s2047_s23  ;;  %649 = vrot.lane.b32.xlu1 %v2125_v4, %s2047_s23 }
  0x5e   :  { %676 = vrot.lane.b32.xlu0 %v2136_v6, %s2046_s22  ;;  %651 = vrot.lane.b32.xlu1 %v2136_v6, %s2047_s23 }
  0x62   :  { %961 = vperm.xlu0 %2038, %v958_v8  }
  0x74   :  { %v166_v11 = vpop.permute.xlu0 %165  ;;  %v164_v12 = vpop.permute.xlu1 %163 }
  0x75   :  { %v180_v16 = vsel %vm175_vm0, %v164_v12, %v166_v11 }
  0x78   :  { %v168_v13 = vpop.permute.xlu0 %167  ;;  %v170_v14 = vpop.permute.xlu1 %169 }
  0x79   :  { %v179_v15 = vsel %vm175_vm0, %v166_v11, %v168_v13  ;;  %v178_v20 = vsel %vm175_vm0, %v168_v13, %v170_v14 }
  0x7a   :  { %238 = vmatprep.subr.mxu0 %v179_v15 }
  0x7b   :  { %239 = vmatpush1.msra.mxu0 %v180_v16 }
  0x7c   :  { %v172_v17 = vpop.permute.xlu0 %171  ;;  %v133_v18 = vpop.permute.xlu1 %132  ;;  %240 = vmatprep.subr.mxu0 %v2097_v0 }
  0x7d   :  { %v177_v19 = vsel %vm175_vm0, %v170_v14, %v172_v17  ;;  %241 = vmatpush1.msra.mxu0 %v2102_v1 }
  0x7e   :  { %309 = vmatprep.subr.mxu1 %v177_v19 }
  0x7f   :  { %310 = vmatpush1.msra.mxu1 %v178_v20 }
  0x80   :  { %v135_v21 = vpop.permute.xlu0 %134  ;;  %v143_v22 = vpop.permute.xlu1 %142  ;;  %311 = vmatprep.subr.mxu1 %v2116_v3 }
  0x81   :  { %v149_v23 = vsel %vm144_vm1, %v133_v18, %v135_v21  ;;  %v150_v24 = vsel %vm144_vm1, %v143_v22, %v133_v18  ;;  %312 = vmatpush1.msra.mxu1 %v2111_v2 }
  0x82   :  { %242 = vmatprep.subr.mxu0 %v149_v23 }
  0x83   :  { %243 = vmatpush1.msra.mxu0 %v150_v24 }
  0x84   :  { %v174_v26 = vpop.permute.xlu0 %173  ;;  %v137_v27 = vpop.permute.xlu1 %136  ;;  %2007 = vmatmul.mubr.msk.f32.vlgmr.msra.gmra.mxu0 %vm208_vm2, %v2006_v25 }
  0x85   :  { %v176_v28 = vsel %vm175_vm0, %v172_v17, %v174_v26  ;;  %v181_v29 = vsel %vm175_vm0, %v174_v26, %v164_v12  ;;  %418 = vmatprep.mubr.f32.mxu0 %v2040_v5  ;;  %v148_v33 = vsel %vm144_vm1, %v135_v21, %v137_v27 }
  0x86   :  { %380 = vmatprep.subr.mxu0 %v181_v29 }
  0x87   :  { %381 = vmatpush1.msra.mxu0 %v176_v28 }
  0x88   :  { %v139_v30 = vpop.permute.xlu0 %138  ;;  %v89_v31 = vpop.permute.xlu1 %88  ;;  %382 = vmatprep.subr.mxu0 %v2136_v6 }
  0x89   :  { %v147_v32 = vsel %vm144_vm1, %v137_v27, %v139_v30  ;;  %383 = vmatpush1.msra.mxu0 %v2125_v4 }
  0x8a   :  { %313 = vmatprep.subr.mxu1 %v147_v32 }
  0x8b   :  { %314 = vmatpush1.msra.mxu1 %v148_v33 }
  0x8c   :  { %v91_v34 = vpop.permute.xlu0 %90  ;;  %v99_v35 = vpop.permute.xlu1 %98  ;;  %2008 = vmatmul.mubr.msk.f32.vlgmr.msra.gmra.mxu1 %vm208_vm2, %v2006_v25 }
  0x8d   :  { %v106_v36 = vsel %vm100_vm3, %v99_v35, %v89_v31  ;;  %v105_v37 = vsel %vm100_vm3, %v89_v31, %v91_v34  ;;  %492 = vmatprep.mubr.f32.mxu1 %v2040_v5  ;;  %v2013_v31 = vld [vmem:[%s2781_s3 + $0x10] sm:$0xff] }
  0x8e   :  { %454 = vmatprep.subr.mxu1 %v105_v37 }
  0x8f   :  { %455 = vmatpush1.msra.mxu1 %v106_v36 }
  0x90   :  { %v141_v38 = vpop.permute.xlu0 %140  ;;  %v64_v39 = vpop.permute.xlu1 %63 }
  0x91   :  { %v146_v40 = vsel %vm144_vm1, %v139_v30, %v141_v38  ;;  %v145_v41 = vsel %vm144_vm1, %v141_v38, %v143_v22 }
  0x92   :  { %384 = vmatprep.subr.mxu0 %v145_v41 }
  0x93   :  { %385 = vmatpush1.msra.mxu0 %v146_v40 }
  0x94   :  { %v66_v42 = vpop.permute.xlu0 %65  ;;  %v74_v43 = vpop.permute.xlu1 %73  ;;  %2009 = vmatmul.mubr.msk.f32.vlgmr.msra.gmra.mxu0 %vm208_vm2, %v2006_v25 }
  0x95   :  { %v81_v44 = vsel %vm75_vm4, %v74_v43, %v64_v39  ;;  %v80_v45 = vsel %vm75_vm4, %v64_v39, %v66_v42  ;;  %563 = vmatprep.mubr.f32.mxu0 %v2040_v5 }
  0x96   :  { %456 = vmatprep.subr.mxu1 %v80_v45 }
  0x97   :  { %457 = vmatpush1.msra.mxu1 %v81_v44 }
  0x98   :  { %v93_v46 = vpop.permute.xlu0 %92  ;;  %v95_v47 = vpop.permute.xlu1 %94 }
  0x99   :  { %v104_v48 = vsel %vm100_vm3, %v91_v34, %v93_v46  ;;  %v103_v49 = vsel %vm100_vm3, %v93_v46, %v95_v47 }
  0x9a   :  { %525 = vmatprep.subr.mxu0 %v103_v49  ;;  %v2366_v49 = vshrl.u32 %v48_v9, 7 }
  0x9b   :  { %526 = vmatpush1.msra.mxu0 %v104_v48 }
  0x9c   :  { %v37_v50 = vpop.permute.xlu0 %36  ;;  %v39_v51 = vpop.permute.xlu1 %38 }
  0x9d   :  { %v55_v52 = vsel %vm50_vm5, %v37_v50, %v39_v51 }
  0x9e   :  { %458 = vmatprep.subr.mxu1 %v55_v52 }
  0xa0   :  { %v47_v53 = vpop.permute.xlu0 %46  ;;  %v68_v54 = vpop.permute.xlu1 %67 }
  0xa1   :  { %v56_v56 = vsel %vm50_vm5, %v47_v53, %v37_v50  ;;  %v79_v62 = vsel %vm75_vm4, %v66_v42, %v68_v54  ;;  %v1011_v50 = vsub.s32 5, %v2366_v49 }
  0xa2   :  { %459 = vmatpush1.msra.mxu1 %v56_v56 }
  0xa3   :  { %2010 = vmatmul.mubr.msk.f32.vlgmr.msra.gmra.mxu1 %vm208_vm2, %v113_v55 }
  0xa4   :  { %v70_v57 = vpop.permute.xlu0 %69  ;;  %v97_v58 = vpop.permute.xlu1 %96  ;;  %634 = vmatprep.mubr.f32.mxu1 %v2040_v5 }
  0xa5   :  { %v102_v59 = vsel %vm100_vm3, %v95_v47, %v97_v58  ;;  %v78_v60 = vsel %vm75_vm4, %v68_v54, %v70_v57  ;;  %v101_v61 = vsel %vm100_vm3, %v97_v58, %v99_v35 }
  0xa6   :  { %527 = vmatprep.subr.mxu0 %v78_v60  ;;  %596 = vmatprep.subr.mxu1 %v101_v61 }
  0xa7   :  { %528 = vmatpush1.msra.mxu0 %v79_v62  ;;  %597 = vmatpush1.msra.mxu1 %v102_v59 }
  0xa8   :  { %v41_v63 = vpop.permute.xlu0 %40  ;;  %v43_v0 = vpop.permute.xlu1 %42 }
  0xa9   :  { %v54_v1 = vsel %vm50_vm5, %v39_v51, %v41_v63  ;;  %v53_v2 = vsel %vm50_vm5, %v41_v63, %v43_v0  ;;  %v2372_v51 = vld [vmem:[%s2782_s7] sm:$0x3f]  ;;  %v991_v63 = vsub.s32 0, %v2366_v49 }
  0xaa   :  { %529 = vmatprep.subr.mxu0 %v53_v2  ;;  %v1012_v52 = vrot.slane %v2372_v51, %v1011_v50 }
  0xab   :  { %530 = vmatpush1.msra.mxu0 %v54_v1 }
  0xac   :  { %v72_v3 = vpop.permute.xlu0 %71  ;;  %v694_v4 = vpop.permute.xlu1 %693  ;;  %2011 = vmatmul.mubr.msk.f32.vlgmr.msra.gmra.mxu0 %vm208_vm2, %v113_v55 }
  0xad   :  { %v77_v6 = vsel %vm75_vm4, %v70_v57, %v72_v3  ;;  %v76_v7 = vsel %vm75_vm4, %v72_v3, %v74_v43  ;;  %803 = vmatprep.mubr.f32.mxu0 %v2040_v5 }
  0xae   :  { %598 = vmatprep.subr.mxu1 %v76_v7 }
  0xaf   :  { %599 = vmatpush1.msra.mxu1 %v77_v6  ;;  %v992_v6 = vrot.slane %v2372_v51, %v991_v63 }
  0xb0   :  { %v696_v8 = vpop.permute.xlu0 %695  ;;  %v45_v11 = vpop.permute.xlu1 %44 }
  0xb1   :  { %v52_v12 = vsel %vm50_vm5, %v43_v0, %v45_v11  ;;  %v51_v13 = vsel %vm50_vm5, %v45_v11, %v47_v53  ;;  %v707_v14 = vsel %vm703_vm6, %v694_v4, %v696_v8 }
  0xb2   :  { %600 = vmatprep.subr.mxu1 %v51_v13  ;;  %765 = vmatprep.subr.mxu0 %v707_v14 }
  0xb3   :  { %601 = vmatpush1.msra.mxu1 %v52_v12 }
  0xb4   :  { %v692_v15 = vpop.permute.xlu0 %691  ;;  %v669_v16 = vpop.permute.xlu1 %668  ;;  %2012 = vmatmul.mubr.msk.f32.vlgmr.msra.gmra.mxu1 %vm208_vm2, %v113_v55 }
  0xb5   :  { %v708_v17 = vsel %vm703_vm6, %v692_v15, %v694_v4  ;;  %874 = vmatprep.mubr.f32.mxu1 %v2040_v5 }
  0xb6   :  { %766 = vmatpush1.msra.mxu0 %v708_v17 }
  0xb8   :  { %v671_v18 = vpop.permute.xlu0 %670  ;;  %v667_v19 = vpop.permute.xlu1 %666 }
  0xb9   :  { %v683_v20 = vsel %vm678_vm7, %v667_v19, %v669_v16  ;;  %v682_v21 = vsel %vm678_vm7, %v669_v16, %v671_v18 }
  0xba   :  { %767 = vmatprep.subr.mxu0 %v682_v21 }
  0xbb   :  { %768 = vmatpush1.msra.mxu0 %v683_v20 }
  0xbc   :  { %v698_v22 = vpop.permute.xlu0 %697  ;;  %v700_v23 = vpop.permute.xlu1 %699 }
  0xbd   :  { %v706_v24 = vsel %vm703_vm6, %v696_v8, %v698_v22  ;;  %v705_v25 = vsel %vm703_vm6, %v698_v22, %v700_v23 }
  0xbe   :  { %836 = vmatprep.subr.mxu1 %v705_v25 }
  0xbf   :  { %837 = vmatpush1.msra.mxu1 %v706_v24 }
  0xc0   :  { %v644_v26 = vpop.permute.xlu0 %643  ;;  %v646_v27 = vpop.permute.xlu1 %645 }
  0xc1   :  { %v657_v28 = vsel %vm653_vm8, %v644_v26, %v646_v27 }
  0xc2   :  { %769 = vmatprep.subr.mxu0 %v657_v28 }
  0xc4   :  { %v642_v29 = vpop.permute.xlu0 %641  ;;  %v673_v30 = vpop.permute.xlu1 %672 }
  0xc5   :  { %v658_v32 = vsel %vm653_vm8, %v642_v29, %v644_v26  ;;  %v681_v38 = vsel %vm678_vm7, %v671_v18, %v673_v30 }
  0xc6   :  { %770 = vmatpush1.msra.mxu0 %v658_v32 }
  0xc7   :  { %2014 = vmatmul.mubr.msk.f32.vlgmr.msra.gmra.mxu0 %vm208_vm2, %v2013_v31 }
  0xc8   :  { %v675_v33 = vpop.permute.xlu0 %674  ;;  %v702_v34 = vpop.permute.xlu1 %701  ;;  %945 = vmatprep.mubr.f32.mxu0 %v2040_v5 }
  0xc9   :  { %v704_v35 = vsel %vm703_vm6, %v700_v23, %v702_v34  ;;  %v680_v36 = vsel %vm678_vm7, %v673_v30, %v675_v33  ;;  %v709_v37 = vsel %vm703_vm6, %v702_v34, %v692_v15  ;;  %v999_v15 = vsub.s32 2, %v2366_v49 }
  0xca   :  { %838 = vmatprep.subr.mxu1 %v680_v36  ;;  %907 = vmatprep.subr.mxu0 %v709_v37  ;;  %v995_v37 = vsub.s32 1, %v2366_v49 }
  0xcb   :  { %839 = vmatpush1.msra.mxu1 %v681_v38  ;;  %908 = vmatpush1.msra.mxu0 %v704_v35 }
  0xcc   :  { %v648_v39 = vpop.permute.xlu0 %647  ;;  %v650_v40 = vpop.permute.xlu1 %649 }
  0xcd   :  { %v656_v41 = vsel %vm653_vm8, %v646_v27, %v648_v39  ;;  %v655_v42 = vsel %vm653_vm8, %v648_v39, %v650_v40 }
  0xce   :  { %840 = vmatprep.subr.mxu1 %v655_v42 }
  0xcf   :  { %841 = vmatpush1.msra.mxu1 %v656_v41  ;;  %v1003_v41 = vsub.s32 3, %v2366_v49 }
  0xd0   :  { %v677_v43 = vpop.permute.xlu0 %676  ;;  %2015 = vmatmul.mubr.msk.f32.vlgmr.msra.gmra.mxu1 %vm208_vm2, %v2013_v31  ;;  %v652_v44 = vpop.permute.xlu1 %651 }
  0xd1   :  { %v679_v45 = vsel %vm678_vm7, %v675_v33, %v677_v43  ;;  %v684_v46 = vsel %vm678_vm7, %v677_v43, %v667_v19  ;;  %1257 = vmatprep.mubr.f32.mxu1 %v2040_v5  ;;  %v659_v47 = vsel %vm653_vm8, %v652_v44, %v642_v29  ;;  %v654_v48 = vsel %vm653_vm8, %v650_v40, %v652_v44 }
  0xd2   :  { %909 = vmatprep.subr.mxu0 %v684_v46  ;;  %v1000_v19 = vrot.slane %v2372_v51, %v999_v15  ;;  %v996_v40 = vrot.slane %v2372_v51, %v995_v37 }
  0xd3   :  { %910 = vmatpush1.msra.mxu0 %v679_v45  ;;  %v1004_v45 = vrot.slane %v2372_v51, %v1003_v41 }
  0xd4   :  { %911 = vmatprep.subr.mxu0 %v659_v47 }
  0xd5   :  { %912 = vmatpush1.msra.mxu0 %v654_v48 }
  0xd6   :  { %2016 = vmatmul.mubr.msk.f32.vlgmr.msra.gmra.mxu0 %vm208_vm2, %v2013_v31 }
  0xd7   :  { %1328 = vmatprep.mubr.f32.mxu0 %v2040_v5 }
  0xdd   :  { %v2378_v0 = vpop.permute.xlu0 %961 }
 0x144   :  { %v278_v53 = vpop.f32.mrf.mxu0 }
 0x146   :  { %v280_v54 = vpop.f32.mrf.mxu0 }
 0x14c   :  { %v349_v56 = vpop.f32.mrf.mxu1 }
 0x14e   :  { %v351_v58 = vpop.f32.mrf.mxu1 }
 0x154   :  { %v2375_v55 = vpop.f32.mrf.mxu0 }
 0x156   :  { %v422_v57 = vpop.f32.mrf.mxu0 }
 0x163   :  { %v494_v60 = vpop.f32.mrf.mxu1 }
 0x164   :  { %v495_v61 = vadd.f32 %v494_v60, %v278_v53  ;;  %v1007_v53 = vsub.s32 4, %v2366_v49  ;;  %v1936_v49 = vld [vmem:[%s2783_s6] sm:$0xff] }
 0x165   :  { %v496_v1 = vpop.f32.mrf.mxu1 }
 0x166   :  { %v497_v29 = vadd.f32 %v496_v1, %v280_v54 }
 0x16c   :  { %v565_v59 = vpop.f32.mrf.mxu0 }
 0x16d   :  { %v566_v12 = vadd.f32 %v565_v59, %v349_v56 }
 0x16e   :  { %v567_v9 = vpop.f32.mrf.mxu0 }
 0x16f   :  { %v568_v34 = vadd.f32 %v567_v9, %v351_v58 }
 0x174   :  { %v2380_v3 = vpop.f32.mrf.mxu1 }
 0x175   :  { %v637_v48 = vadd.f32 %v2380_v3, %v2375_v55  ;;  %v1008_v55 = vrot.slane %v2372_v51, %v1007_v53 }
 0x176   :  { %v638_v11 = vpop.f32.mrf.mxu1 }
 0x177   :  { %v639_v22 = vadd.f32 %v638_v11, %v422_v57 }
 0x187   :  { %v805_v62 = vpop.f32.mrf.mxu0 }
 0x188   :  { %v952_v2 = vadd.f32 %v805_v62, %v495_v61 }
 0x189   :  { %v807_v18 = vpop.f32.mrf.mxu0 }
 0x18a   :  { %v964_v4 = vadd.f32 %v2378_v0, %v952_v2  ;;  %v953_v32 = vadd.f32 %v807_v18, %v497_v29 }
 0x18c   :  { %vm970_vm9 = vcmp.gt.f32.partialorder %v964_v4, 0.0  ;;  %v976_v7 = vmul.f32 0.2, %v964_v4  ;;  %v965_v35 = vadd.f32 %v2378_v0, %v953_v32 }
 0x18e   :  { %v982_v8 = vsel %vm970_vm9, %v964_v4, %v976_v7  ;;  %v977_v38 = vmul.f32 0.2, %v965_v35  ;;  %vm971_vm12 = vcmp.gt.f32.partialorder %v965_v35, 0.0 }
 0x18f   :  { %v2384_v13 = vmul.f32 %v992_v6, %v982_v8 }
 0x190   :  { %v876_v14 = vpop.f32.mrf.mxu1  ;;  %v983_v42 = vsel %vm971_vm12, %v965_v35, %v977_v38  ;;  %v2017_v35 = vld [vmem:[%s2784_s5 + $0x8] sm:$0xff] }
 0x191   :  { %v954_v16 = vadd.f32 %v876_v14, %v566_v12  ;;  %1146 = vrot.lane.b32.xlu0 %v2384_v13, %s2039_s9  ;;  %v2427_v44 = vmul.f32 %v996_v40, %v983_v42 }
 0x192   :  { %v878_v33 = vpop.f32.mrf.mxu1 }
 0x193   :  { %v966_v17 = vadd.f32 %v2378_v0, %v954_v16  ;;  %v955_v36 = vadd.f32 %v878_v33, %v568_v34 }
 0x195   :  { %vm972_vm10 = vcmp.gt.f32.partialorder %v966_v17, 0.0  ;;  %v978_v20 = vmul.f32 0.2, %v966_v17  ;;  %1073 = vrot.lane.b32.xlu0 %v2384_v13, %s2042_s19  ;;  %v967_v39 = vadd.f32 %v2378_v0, %v955_v36 }
 0x196   :  { %v947_v21 = vpop.f32.mrf.mxu0 }
 0x197   :  { %v984_v23 = vsel %vm972_vm10, %v966_v17, %v978_v20  ;;  %v979_v43 = vmul.f32 0.2, %v967_v39  ;;  %vm973_vm13 = vcmp.gt.f32.partialorder %v967_v39, 0.0  ;;  %v956_v50 = vadd.f32 %v947_v21, %v637_v48 }
 0x198   :  { %v2393_v24 = vmul.f32 %v1000_v19, %v984_v23  ;;  %v949_v25 = vpop.f32.mrf.mxu0 }
 0x199   :  { %v957_v26 = vadd.f32 %v949_v25, %v639_v22  ;;  %v985_v46 = vsel %vm973_vm13, %v967_v39, %v979_v43 }
 0x19a   :  { %1077 = vrot.lane.b32.xlu0 %v2393_v24, %s2042_s19  ;;  %1150 = vrot.lane.b32.xlu1 %v2393_v24, %s2039_s9  ;;  %v2434_v47 = vmul.f32 %v1004_v45, %v985_v46 }
 0x19b   :  { %v969_v27 = vadd.f32 %v2378_v0, %v957_v26 }
 0x19d   :  { %vm975_vm11 = vcmp.gt.f32.partialorder %v969_v27, 0.0  ;;  %v981_v28 = vmul.f32 0.2, %v969_v27 }
 0x19e   :  { %1025 = vrot.lane.b32.xlu0 %v2384_v13, %s2044_s20  ;;  %1116 = vrot.lane.b32.xlu1 %v2384_v13, %s2041_s16 }
 0x19f   :  { %v987_v30 = vsel %vm975_vm11, %v969_v27, %v981_v28 }
 0x1a0   :  { %v2404_v31 = vmul.f32 %v1012_v52, %v987_v30  ;;  %v968_v52 = vadd.f32 %v2378_v0, %v956_v50 }
 0x1a2   :  { %1029 = vrot.lane.b32.xlu0 %v2393_v24, %s2044_s20  ;;  %1120 = vrot.lane.b32.xlu1 %v2393_v24, %s2041_s16  ;;  %v980_v54 = vmul.f32 0.2, %v968_v52  ;;  %vm974_vm14 = vcmp.gt.f32.partialorder %v968_v52, 0.0 }
 0x1a4   :  { %v986_v56 = vsel %vm974_vm14, %v968_v52, %v980_v54 }
 0x1a5   :  { %v2465_v57 = vmul.f32 %v1008_v55, %v986_v56 }
 0x1a6   :  { %1670 = vrot.lane.b32.xlu0 %v2384_v13, %s2045_s21  ;;  %1049 = vrot.lane.b32.xlu1 %v2384_v13, %s2043_s0 }
 0x1aa   :  { %1646 = vrot.lane.b32.xlu0 %v2384_v13, %s2046_s22  ;;  %1053 = vrot.lane.b32.xlu1 %v2393_v24, %s2043_s0 }
 0x1ae   :  { %1622 = vrot.lane.b32.xlu0 %v2384_v13, %s2047_s23  ;;  %1674 = vrot.lane.b32.xlu1 %v2393_v24, %s2045_s21 }
 0x1b2   :  { %1118 = vrot.lane.b32.xlu0 %v2427_v44, %s2041_s16  ;;  %1650 = vrot.lane.b32.xlu1 %v2393_v24, %s2046_s22 }
 0x1b6   :  { %1626 = vrot.lane.b32.xlu1 %v2393_v24, %s2047_s23  ;;  %1152 = vrot.lane.b32.xlu0 %v2434_v47, %s2039_s9 }
 0x1ba   :  { %1148 = vrot.lane.b32.xlu1 %v2427_v44, %s2039_s9  ;;  %1122 = vrot.lane.b32.xlu0 %v2434_v47, %s2041_s16 }
 0x1be   :  { %1075 = vrot.lane.b32.xlu1 %v2427_v44, %s2042_s19  ;;  %1051 = vrot.lane.b32.xlu0 %v2427_v44, %s2043_s0 }
 0x1c2   :  { %1079 = vrot.lane.b32.xlu1 %v2434_v47, %s2042_s19  ;;  %1055 = vrot.lane.b32.xlu0 %v2434_v47, %s2043_s0 }
 0x1c6   :  { %1027 = vrot.lane.b32.xlu1 %v2427_v44, %s2044_s20  ;;  %1672 = vrot.lane.b32.xlu0 %v2427_v44, %s2045_s21 }
 0x1ca   :  { %1031 = vrot.lane.b32.xlu1 %v2434_v47, %s2044_s20  ;;  %1648 = vrot.lane.b32.xlu0 %v2427_v44, %s2046_s22 }
 0x1ce   :  { %1624 = vrot.lane.b32.xlu0 %v2427_v44, %s2047_s23  ;;  %1154 = vrot.lane.b32.xlu1 %v2465_v57, %s2039_s9 }
 0x1d2   :  { %1124 = vrot.lane.b32.xlu1 %v2465_v57, %s2041_s16  ;;  %1156 = vrot.lane.b32.xlu0 %v2404_v31, %s2039_s9 }
 0x1d6   :  { %1081 = vrot.lane.b32.xlu1 %v2465_v57, %s2042_s19  ;;  %1678 = vrot.lane.b32.xlu0 %v2465_v57, %s2045_s21 }
 0x1da   :  { %1057 = vrot.lane.b32.xlu1 %v2465_v57, %s2043_s0  ;;  %1083 = vrot.lane.b32.xlu0 %v2404_v31, %s2042_s19 }
 0x1de   :  { %1033 = vrot.lane.b32.xlu1 %v2465_v57, %s2044_s20  ;;  %1035 = vrot.lane.b32.xlu0 %v2404_v31, %s2044_s20 }
 0x1e2   :  { %1652 = vrot.lane.b32.xlu0 %v2434_v47, %s2046_s22  ;;  %1126 = vrot.lane.b32.xlu1 %v2404_v31, %s2041_s16 }
 0x1e6   :  { %1656 = vrot.lane.b32.xlu0 %v2404_v31, %s2046_s22  ;;  %1676 = vrot.lane.b32.xlu1 %v2434_v47, %s2045_s21 }
 0x1ea   :  { %1630 = vrot.lane.b32.xlu0 %v2465_v57, %s2047_s23  ;;  %1059 = vrot.lane.b32.xlu1 %v2404_v31, %s2043_s0 }
 0x1ee   :  { %1939 = vperm.xlu0 %2038, %v1936_v49   ;;  %1654 = vrot.lane.b32.xlu1 %v2465_v57, %s2046_s22 }
 0x1f2   :  { %1628 = vrot.lane.b32.xlu1 %v2434_v47, %s2047_s23 }
 0x1f6   :  { %1680 = vrot.lane.b32.xlu1 %v2404_v31, %s2045_s21 }
 0x1fa   :  { %1632 = vrot.lane.b32.xlu1 %v2404_v31, %s2047_s23 }
 0x203   :  { %v2510_v51 = vpop.permute.xlu0 %1146 }
 0x207   :  { %v1074_v58 = vpop.permute.xlu0 %1073 }
 0x20c   :  { %v2512_v59 = vpop.permute.xlu0 %1077  ;;  %v1151_v60 = vpop.permute.xlu1 %1150 }
 0x210   :  { %v2514_v9 = vpop.permute.xlu0 %1025  ;;  %v1117_v61 = vpop.permute.xlu1 %1116 }
 0x214   :  { %v2516_v62 = vpop.permute.xlu0 %1029  ;;  %v1121_v63 = vpop.permute.xlu1 %1120 }
 0x218   :  { %v2518_v0 = vpop.permute.xlu0 %1670  ;;  %v2520_v1 = vpop.permute.xlu1 %1049 }
 0x21c   :  { %v2522_v2 = vpop.permute.xlu0 %1646  ;;  %v2524_v3 = vpop.permute.xlu1 %1053 }
 0x220   :  { %v2526_v4 = vpop.permute.xlu0 %1622  ;;  %v2528_v6 = vpop.permute.xlu1 %1674 }
 0x224   :  { %v1119_v7 = vpop.permute.xlu0 %1118  ;;  %v2530_v8 = vpop.permute.xlu1 %1650 }
 0x225   :  { %v1132_v20 = vsel %vm144_vm1, %v1117_v61, %v1119_v7  ;;  %v1131_v36 = vsel %vm144_vm1, %v1119_v7, %v1121_v63 }
 0x228   :  { %v1153_v11 = vpop.permute.xlu0 %1152  ;;  %v2532_v12 = vpop.permute.xlu1 %1626 }
 0x229   :  { %v1160_v30 = vsel %vm175_vm0, %v1151_v60, %v1153_v11 }
 0x22c   :  { %v1123_v14 = vpop.permute.xlu0 %1122  ;;  %v1149_v15 = vpop.permute.xlu1 %1148 }
 0x22d   :  { %v1162_v16 = vsel %vm175_vm0, %v2510_v51, %v1149_v15  ;;  %v1161_v17 = vsel %vm175_vm0, %v1149_v15, %v1151_v60  ;;  %v1130_v34 = vsel %vm144_vm1, %v1121_v63, %v1123_v14 }
 0x22e   :  { %1219 = vmatprep.subr.mxu1 %v1161_v17 }
 0x22f   :  { %1220 = vmatpush1.msra.mxu1 %v1162_v16 }
 0x230   :  { %v2539_v18 = vpop.permute.xlu0 %1051  ;;  %1221 = vmatprep.subr.mxu1 %v2427_v44  ;;  %v1076_v19 = vpop.permute.xlu1 %1075 }
 0x231   :  { %1222 = vmatpush1.msra.mxu1 %v2384_v13  ;;  %v1089_v37 = vsel %vm100_vm3, %v1074_v58, %v1076_v19  ;;  %v1065_v42 = vsel %vm75_vm4, %v2520_v1, %v2539_v18 }
 0x232   :  { %1223 = vmatprep.subr.mxu1 %v1132_v20 }
 0x234   :  { %v2545_v21 = vpop.permute.xlu0 %1055  ;;  %v2547_v22 = vpop.permute.xlu1 %1079 }
 0x235   :  { %v1087_v55 = vsel %vm100_vm3, %v2512_v59, %v2547_v22  ;;  %v1063_v49 = vsel %vm75_vm4, %v2524_v3, %v2545_v21 }
 0x238   :  { %v2549_v23 = vpop.permute.xlu0 %1672  ;;  %v2551_v25 = vpop.permute.xlu1 %1027 }
 0x239   :  { %v1686_v15 = vsel %vm703_vm6, %v2518_v0, %v2549_v23 }
 0x23c   :  { %v2553_v26 = vpop.permute.xlu0 %1648  ;;  %v2555_v27 = vpop.permute.xlu1 %1031 }
 0x23d   :  { %v1039_v63 = vsel %vm50_vm5, %v2516_v62, %v2555_v27  ;;  %v1662_v20 = vsel %vm678_vm7, %v2522_v2, %v2553_v26 }
 0x240   :  { %v2557_v28 = vpop.permute.xlu0 %1624  ;;  %v1155_v29 = vpop.permute.xlu1 %1154 }
 0x241   :  { %v1159_v13 = vsel %vm175_vm0, %v1153_v11, %v1155_v29  ;;  %v1685_v11 = vsel %vm703_vm6, %v2549_v23, %v2528_v6  ;;  %v1638_v23 = vsel %vm653_vm8, %v2526_v4, %v2557_v28 }
 0x242   :  { %1290 = vmatprep.subr.mxu0 %v1159_v13 }
 0x243   :  { %1291 = vmatpush1.msra.mxu0 %v1160_v30 }
 0x244   :  { %v1157_v32 = vpop.permute.xlu0 %1156  ;;  %1292 = vmatprep.subr.mxu0 %v2434_v47  ;;  %v1125_v33 = vpop.permute.xlu1 %1124 }
 0x245   :  { %1293 = vmatpush1.msra.mxu0 %v2393_v24  ;;  %v1163_v46 = vsel %vm175_vm0, %v1157_v32, %v2510_v51  ;;  %v1158_v47 = vsel %vm175_vm0, %v1155_v29, %v1157_v32  ;;  %v1129_v53 = vsel %vm144_vm1, %v1123_v14, %v1125_v33  ;;  %v1097_v51 = vld [vmem:[%s2784_s5] sm:$0xff] }
 0x246   :  { %1294 = vmatprep.subr.mxu0 %v1130_v34 }
 0x247   :  { %1295 = vmatpush1.msra.mxu0 %v1131_v36 }
 0x248   :  { %v2574_v38 = vpop.permute.xlu0 %1678  ;;  %1435 = vmatprep.subr.mxu0 %v1089_v37  ;;  %v1082_v39 = vpop.permute.xlu1 %1081  ;;  %2019 = vmatmul.mubr.msk.f32.vlgmr.msra.gmra.mxu0 %vm208_vm2, %v2017_v35 }
 0x249   :  { %1473 = vmatprep.mubr.f32.mxu0 %v2040_v5 }
 0x24c   :  { %v1084_v24 = vpop.permute.xlu0 %1083  ;;  %v1058_v40 = vpop.permute.xlu1 %1057 }
 0x24d   :  { %v1090_v41 = vsel %vm100_vm3, %v1084_v24, %v1074_v58  ;;  %v1064_v58 = vsel %vm75_vm4, %v2539_v18, %v2524_v3  ;;  %v1086_v3 = vsel %vm100_vm3, %v2547_v22, %v1082_v39 }
 0x24e   :  { %1436 = vmatpush1.msra.mxu0 %v1090_v41 }
 0x24f   :  { %1437 = vmatprep.subr.mxu0 %v1065_v42 }
 0x250   :  { %v1034_v43 = vpop.permute.xlu1 %1033  ;;  %v1036_v50 = vpop.permute.xlu0 %1035 }
 0x251   :  { %v1037_v16 = vsel %vm50_vm5, %v1034_v43, %v1036_v50  ;;  %v1038_v17 = vsel %vm50_vm5, %v2555_v27, %v1034_v43 }
 0x254   :  { %v1127_v44 = vpop.permute.xlu1 %1126  ;;  %v1653_v60 = vpop.permute.xlu0 %1652 }
 0x255   :  { %v1133_v45 = vsel %vm144_vm1, %v1127_v44, %v1117_v61  ;;  %v1128_v52 = vsel %vm144_vm1, %v1125_v33, %v1127_v44 }
 0x256   :  { %1224 = vmatpush1.msra.mxu1 %v1133_v45 }
 0x257   :  { %2018 = vmatmul.mubr.msk.f32.vlgmr.msra.gmra.mxu1 %vm208_vm2, %v2017_v35  ;;  %1361 = vmatprep.subr.mxu1 %v1163_v46 }
 0x258   :  { %1362 = vmatpush1.msra.mxu1 %v1158_v47  ;;  %v2592_v48 = vpop.permute.xlu1 %1676  ;;  %1399 = vmatprep.mubr.f32.mxu1 %v2040_v5  ;;  %v1657_v18 = vpop.permute.xlu0 %1656  ;;  %v1972_v47 = vld [vmem:[%s2785_s2] sm:$0xff] }
 0x259   :  { %1363 = vmatprep.subr.mxu1 %v2404_v31  ;;  %v1088_v31 = vsel %vm100_vm3, %v1076_v19, %v2512_v59  ;;  %v1042_v59 = vsel %vm50_vm5, %v1036_v50, %v2514_v9  ;;  %v1661_v19 = vsel %vm678_vm7, %v2553_v26, %v2530_v8  ;;  %v2024_v26 = vld [vmem:[%s2784_s5 + $0x10] sm:$0xff]  ;;  %v1684_v27 = vsel %vm703_vm6, %v2528_v6, %v2592_v48 }
 0x25a   :  { %1364 = vmatpush1.msra.mxu1 %v2465_v57  ;;  %v1041_v57 = vsel %vm50_vm5, %v2514_v9, %v2551_v25  ;;  %v1085_v9 = vsel %vm100_vm3, %v1082_v39, %v1084_v24  ;;  %v1660_v6 = vsel %vm678_vm7, %v2530_v8, %v1653_v60  ;;  %v1663_v8 = vsel %vm678_vm7, %v1657_v18, %v2522_v2 }
 0x25b   :  { %1365 = vmatprep.subr.mxu1 %v1128_v52 }
 0x25c   :  { %1366 = vmatpush1.msra.mxu1 %v1129_v53  ;;  %v1060_v54 = vpop.permute.xlu1 %1059  ;;  %v1631_v30 = vpop.permute.xlu0 %1630 }
 0x25d   :  { %v1066_v56 = vsel %vm75_vm4, %v1060_v54, %v2520_v1  ;;  %2020 = vmatmul.mubr.msk.f32.vlgmr.msra.gmra.mxu1 %vm208_vm2, %v2017_v35  ;;  %1506 = vmatprep.subr.mxu1 %v1087_v55  ;;  %v1040_v1 = vsel %vm50_vm5, %v2551_v25, %v2516_v62  ;;  %v1061_v7 = vsel %vm75_vm4, %v1058_v40, %v1060_v54  ;;  %v1973_v55 = vld [vmem:[%s2785_s2 + $0x8] sm:$0xff] }
 0x25e   :  { %1438 = vmatpush1.msra.mxu0 %v1066_v56  ;;  %1507 = vmatpush1.msra.mxu1 %v1088_v31  ;;  %v1062_v62 = vsel %vm75_vm4, %v2545_v21, %v1058_v40  ;;  %v1637_v21 = vsel %vm653_vm8, %v2557_v28, %v2532_v12  ;;  %v1683_v25 = vsel %vm703_vm6, %v2592_v48, %v2574_v38  ;;  %v1978_v31 = vadd.f32 1.0, %v1972_v47 }
 0x25f   :  { %1439 = vmatprep.subr.mxu0 %v1041_v57  ;;  %1508 = vmatprep.subr.mxu1 %v1063_v49 }
 0x260   :  { %1440 = vmatpush1.msra.mxu0 %v1042_v59  ;;  %1509 = vmatpush1.msra.mxu1 %v1064_v58  ;;  %v1655_v61 = vpop.permute.xlu1 %1654  ;;  %v1974_v58 = vld [vmem:[%s2785_s2 + $0x10] sm:$0xff] }
 0x261   :  { %2021 = vmatmul.mubr.msk.f32.vlgmr.msra.gmra.mxu0 %vm208_vm2, %v1097_v51  ;;  %1510 = vmatprep.subr.mxu1 %v1039_v63  ;;  %v1659_v13 = vsel %vm678_vm7, %v1653_v60, %v1655_v61  ;;  %v1658_v35 = vsel %vm678_vm7, %v1655_v61, %v1657_v18  ;;  %v1979_v61 = vadd.f32 1.0, %v1973_v55  ;;  %v1976_v18 = vld [vmem:[%s2785_s2 + $0x20] sm:$0xff] }
 0x262   :  { %1577 = vmatprep.subr.mxu0 %v1085_v9  ;;  %1511 = vmatpush1.msra.mxu1 %v1040_v1  ;;  %v1966_v9 = vld [vmem:[%s2786_s1] sm:$0xff] }
 0x263   :  { %1544 = vmatprep.mubr.f32.mxu1 %v2040_v5  ;;  %1578 = vmatpush1.msra.mxu0 %v1086_v3 }
 0x264   :  { %2022 = vmatmul.mubr.msk.f32.vlgmr.msra.gmra.mxu1 %vm208_vm2, %v1097_v51  ;;  %1579 = vmatprep.subr.mxu0 %v1061_v7  ;;  %v1629_v14 = vpop.permute.xlu1 %1628 }
 0x265   :  { %1743 = vmatprep.subr.mxu1 %v1685_v11  ;;  %1580 = vmatpush1.msra.mxu0 %v1062_v62  ;;  %v1636_v33 = vsel %vm653_vm8, %v2532_v12, %v1629_v14  ;;  %v1975_v62 = vld [vmem:[%s2785_s2 + $0x18] sm:$0xff] }
 0x266   :  { %1744 = vmatpush1.msra.mxu1 %v1686_v15  ;;  %1581 = vmatprep.subr.mxu0 %v1037_v16  ;;  %v1980_v15 = vadd.f32 1.0, %v1974_v58 }
 0x267   :  { %1745 = vmatprep.subr.mxu1 %v1661_v19  ;;  %1582 = vmatpush1.msra.mxu0 %v1038_v17 }
 0x268   :  { %1615 = vmatprep.mubr.f32.mxu0 %v2040_v5  ;;  %1746 = vmatpush1.msra.mxu1 %v1662_v20  ;;  %v1681_v22 = vpop.permute.xlu1 %1680  ;;  %v1967_v20 = vld [vmem:[%s2786_s1 + $0x8] sm:$0xff] }
 0x269   :  { %2023 = vmatmul.mubr.msk.f32.vlgmr.msra.gmra.mxu0 %vm208_vm2, %v1097_v51  ;;  %1747 = vmatprep.subr.mxu1 %v1637_v21  ;;  %v1687_v28 = vsel %vm703_vm6, %v1681_v22, %v2518_v0  ;;  %v1682_v29 = vsel %vm703_vm6, %v2574_v38, %v1681_v22  ;;  %v1635_v0 = vsel %vm653_vm8, %v1629_v14, %v1631_v30  ;;  %v1940_v45 = vpop.permute.xlu0 %1939 }
 0x26a   :  { %1814 = vmatprep.subr.mxu0 %v1683_v25  ;;  %1748 = vmatpush1.msra.mxu1 %v1638_v23 }
 0x26b   :  { %1781 = vmatprep.mubr.f32.mxu1 %v2040_v5  ;;  %1815 = vmatpush1.msra.mxu0 %v1684_v27  ;;  %v1981_v27 = vadd.f32 1.0, %v1975_v62 }
 0x26c   :  { %2025 = vmatmul.mubr.msk.f32.vlgmr.msra.gmra.mxu1 %vm208_vm2, %v2024_v26  ;;  %1816 = vmatprep.subr.mxu0 %v1659_v13  ;;  %v1633_v32 = vpop.permute.xlu1 %1632  ;;  %v1968_v13 = vld [vmem:[%s2786_s1 + $0x10] sm:$0xff] }
 0x26d   :  { %1817 = vmatpush1.msra.mxu0 %v1660_v6  ;;  %1885 = vmatprep.subr.mxu1 %v1687_v28  ;;  %v1639_v34 = vsel %vm653_vm8, %v1633_v32, %v2526_v4  ;;  %v1634_v12 = vsel %vm653_vm8, %v1631_v30, %v1633_v32  ;;  %v1982_v30 = vadd.f32 1.0, %v1976_v18 }
 0x26e   :  { %1818 = vmatprep.subr.mxu0 %v1635_v0  ;;  %1886 = vmatpush1.msra.mxu1 %v1682_v29  ;;  %v1977_v0 = vld [vmem:[%s2785_s2 + $0x28] sm:$0xff] }
 0x26f   :  { %1819 = vmatpush1.msra.mxu0 %v1636_v33  ;;  %1852 = vmatprep.mubr.f32.mxu0 %v2040_v5 }
 0x270   :  { %1887 = vmatprep.subr.mxu1 %v1663_v8  ;;  %2026 = vmatmul.mubr.msk.f32.vlgmr.msra.gmra.mxu0 %vm208_vm2, %v2024_v26 }
 0x271   :  { %1888 = vmatpush1.msra.mxu1 %v1658_v35  ;;  %1923 = vmatprep.mubr.f32.mxu1 %v2040_v5 }
 0x272   :  { %1889 = vmatprep.subr.mxu1 %v1639_v34 }
 0x273   :  { %1890 = vmatpush1.msra.mxu1 %v1634_v12 }
 0x274   :  { %2027 = vmatmul.mubr.msk.f32.vlgmr.msra.gmra.mxu1 %vm208_vm2, %v2024_v26 }
 0x308   :  { %v1330_v36 = vpop.f32.mrf.mxu0 }
 0x30a   :  { %v1332_v38 = vpop.f32.mrf.mxu0 }
 0x317   :  { %v1259_v2 = vpop.f32.mrf.mxu1 }
 0x319   :  { %v1261_v37 = vpop.f32.mrf.mxu1 }
 0x31d   :  { %v1401_v4 = vpop.f32.mrf.mxu1 }
 0x31f   :  { %v1403_v39 = vpop.f32.mrf.mxu1 }
 0x321   :  { %v1475_v24 = vpop.f32.mrf.mxu0 }
 0x322   :  { %v1476_v43 = vadd.f32 %v1475_v24, %v1259_v2  ;;  %v1970_v24 = vld [vmem:[%s2786_s1 + $0x20] sm:$0xff] }
 0x323   :  { %v1477_v41 = vpop.f32.mrf.mxu0 }
 0x324   :  { %v1546_v40 = vpop.f32.mrf.mxu1  ;;  %v1478_v46 = vadd.f32 %v1477_v41, %v1261_v37  ;;  %v1969_v37 = vld [vmem:[%s2786_s1 + $0x18] sm:$0xff] }
 0x325   :  { %v1547_v52 = vadd.f32 %v1546_v40, %v1330_v36 }
 0x326   :  { %v1548_v10 = vpop.f32.mrf.mxu1 }
 0x327   :  { %v1549_v59 = vadd.f32 %v1548_v10, %v1332_v38 }
 0x329   :  { %v1617_v42 = vpop.f32.mrf.mxu0 }
 0x32a   :  { %v1618_v60 = vadd.f32 %v1617_v42, %v1401_v4  ;;  %v1983_v4 = vadd.f32 1.0, %v1977_v0 }
 0x32b   :  { %v1619_v48 = vpop.f32.mrf.mxu0 }
 0x32c   :  { %v1783_v44 = vpop.f32.mrf.mxu1  ;;  %v1620_v11 = vadd.f32 %v1619_v48, %v1403_v39 }
 0x32d   :  { %v1930_v5 = vadd.f32 %v1783_v44, %v1476_v43  ;;  %v1971_v43 = vld [vmem:[%s2786_s1 + $0x28] sm:$0xff] }
 0x32e   :  { %v1785_v50 = vpop.f32.mrf.mxu1 }
 0x32f   :  { %v1942_v53 = vadd.f32 %v1940_v45, %v1930_v5  ;;  %v1931_v54 = vadd.f32 %v1785_v50, %v1478_v46 }
 0x330   :  { %v1854_v56 = vpop.f32.mrf.mxu0 }
 0x331   :  { %vm1948_vm15 = vcmp.gt.f32.partialorder %v1942_v53, 0.0  ;;  %v1954_v57 = vmul.f32 0.2, %v1942_v53  ;;  %v1943_v49 = vadd.f32 %v1940_v45, %v1931_v54  ;;  %v1932_v51 = vadd.f32 %v1854_v56, %v1547_v52 }
 0x332   :  { %v1856_v63 = vpop.f32.mrf.mxu0 }
 0x333   :  { %v1960_v1 = vsel %vm1948_vm15, %v1942_v53, %v1954_v57  ;;  %vm1949_vm0 = vcmp.gt.f32.partialorder %v1943_v49, 0.0  ;;  %v1955_v3 = vmul.f32 0.2, %v1943_v49  ;;  %v1944_v7 = vadd.f32 %v1940_v45, %v1932_v51 }
 0x334   :  { %v1984_v14 = vmul.f32 %v1978_v31, %v1960_v1  ;;  %v1933_v16 = vadd.f32 %v1856_v63, %v1549_v59  ;;  %v1925_v17 = vpop.f32.mrf.mxu1 }
 0x335   :  { %v1961_v19 = vsel %vm1949_vm0, %v1943_v49, %v1955_v3  ;;  %vm1950_vm1 = vcmp.gt.f32.partialorder %v1944_v7, 0.0  ;;  %v1956_v21 = vmul.f32 0.2, %v1944_v7  ;;  %v1934_v22 = vadd.f32 %v1925_v17, %v1618_v60 }
 0x336   :  { %v1990_v23 = vadd.f32 %v1984_v14, %v1966_v9  ;;  %v1985_v25 = vmul.f32 %v1979_v61, %v1961_v19  ;;  %v1945_v26 = vadd.f32 %v1940_v45, %v1933_v16  ;;  %v1927_v28 = vpop.f32.mrf.mxu1 }
 0x337   :  { %v1962_v29 = vsel %vm1950_vm1, %v1944_v7, %v1956_v21  ;;  %v1946_v6 = vadd.f32 %v1940_v45, %v1934_v22  ;;  %v1935_v32 = vadd.f32 %v1927_v28, %v1620_v11 }
 0x338   :  { %1996 = vst [vmem:[%s2787_s8] sm:$0xff] %v1990_v23  ;;  %v1991_v33 = vadd.f32 %v1985_v25, %v1967_v20  ;;  %v1986_v8 = vmul.f32 %v1980_v15, %v1962_v29  ;;  %vm1951_vm2 = vcmp.gt.f32.partialorder %v1945_v26, 0.0  ;;  %v1957_v34 = vmul.f32 0.2, %v1945_v26 }
 0x339   :  { %vm1952_vm3 = vcmp.gt.f32.partialorder %v1946_v6, 0.0  ;;  %v1958_v35 = vmul.f32 0.2, %v1946_v6  ;;  %v1947_v12 = vadd.f32 %v1940_v45, %v1935_v32 }
 0x33a   :  { %1997 = vst [vmem:[%s2787_s8 + $0x8] sm:$0xff] %v1991_v33  ;;  %v1992_v2 = vadd.f32 %v1986_v8, %v1968_v13  ;;  %v1963_v36 = vsel %vm1951_vm2, %v1945_v26, %v1957_v34 }
 0x33b   :  { %v1987_v38 = vmul.f32 %v1981_v27, %v1963_v36  ;;  %v1964_v39 = vsel %vm1952_vm3, %v1946_v6, %v1958_v35  ;;  %vm1953_vm4 = vcmp.gt.f32.partialorder %v1947_v12, 0.0  ;;  %v1959_v40 = vmul.f32 0.2, %v1947_v12 }
 0x33c   :  { %1998 = vst [vmem:[%s2787_s8 + $0x10] sm:$0xff] %v1992_v2  ;;  %v1988_v41 = vmul.f32 %v1982_v30, %v1964_v39 }
 0x33d   :  { %v1993_v10 = vadd.f32 %v1987_v38, %v1969_v37  ;;  %v1965_v42 = vsel %vm1953_vm4, %v1947_v12, %v1959_v40 }
 0x33e   :  { %v1994_v44 = vadd.f32 %v1988_v41, %v1970_v24  ;;  %v1989_v45 = vmul.f32 %v1983_v4, %v1965_v42 }
 0x33f   :  { %1999 = vst [vmem:[%s2787_s8 + $0x18] sm:$0xff] %v1993_v10 }
 0x340   :  { %2000 = vst [vmem:[%s2787_s8 + $0x20] sm:$0xff] %v1994_v44  ;;  %v1995_v46 = vadd.f32 %v1989_v45, %v1971_v43 }
 0x342   :  { %2001 = vst [vmem:[%s2787_s8 + $0x28] sm:$0xff] %v1995_v46 }

</bundles_post_ra>
